<compile_context>
chip_gen: v7x
topology: tpu7x:2x2x1
jax: 0.10.0
libtpu: 0.0.40
codegen_flags: <defaults>
</compile_context>

<pallas_src>
import jax
import jax.numpy as jnp
from jax.experimental import pallas as pl
from jax.experimental.pallas import tpu as pltpu

_LANES = 128
_TM_MAX = 1024                 # 1024x128 f32 tile = 512 KiB per operand
_FALLBACK_ELEMS = 64 * 1024    # below this, plain fused XLA add+relu wins
                               # (kept modest so the module's own shape,
                               # 175,616 elems, exercises the Pallas path)


def _add_relu_kernel(a_ref, b_ref, o_ref):
    # Elementwise hot path on a (tm, 128) VMEM tile; dtype-typed zero.
    s = a_ref[...] + b_ref[...]
    o_ref[...] = jnp.maximum(s, jnp.zeros((), s.dtype))


def _round_up(x, m):
    return ((x + m - 1) // m) * m


def _sublanes_for(dtype):
    # Packed vreg tile heights: f32 -> 8, bf16/f16 -> 16, int8/fp8 -> 32.
    itemsize = int(jnp.dtype(dtype).itemsize)
    return max(8, 32 // max(1, itemsize))


def _add_relu_impl(x121, x135):
    assert x121.shape == x135.shape
    assert x121.dtype == x135.dtype
    orig_shape = x121.shape
    dtype = x121.dtype
    itemsize = int(jnp.dtype(dtype).itemsize)

    n = 1
    for d in orig_shape:
        n *= d

    # Small problems: XLA fuses add+relu into one roofline pass; skip the
    # kernel launch + wrapper reshapes.
    if n < _FALLBACK_ELEMS:
        s = x121 + x135
        return jnp.maximum(s, jnp.zeros((), s.dtype))

    a = jnp.ravel(x121)
    b = jnp.ravel(x135)

    # Pad only the lane dimension to a multiple of 128 (<= 127 extra elems).
    # The row remainder is handled by Pallas trailing partial-block masking,
    # so no 1024-element rounding is needed.  For the module's actual shape
    # this is a no-op (no pad, no final slice).
    n_pad = _round_up(n, _LANES)
    padded = n_pad != n
    if padded:
        pad = n_pad - n
        a = jnp.pad(a, (0, pad))
        b = jnp.pad(b, (0, pad))

    rows = n_pad // _LANES
    a2 = a.reshape(rows, _LANES)
    b2 = b.reshape(rows, _LANES)

    sub = _sublanes_for(dtype)

    if rows <= _TM_MAX:
        # Single full-extent block: zero per-step overhead on 1-TC parts
        # (v5e/v6e); at this size the work is too small for a second v7x TC
        # to matter.  Full-extent block is exempt from the (8,128) rule.
        tm = rows
        grid = (1,)
    else:
        # Balance to an EVEN number of near-equal, sublane-aligned blocks so
        # the "parallel" grid axis splits evenly across both v7x TensorCores
        # and the trailing block stays nearly full.
        gsteps = pl.cdiv(rows, _TM_MAX)
        gsteps = gsteps + (gsteps % 2)
        tm = _round_up(pl.cdiv(rows, gsteps), sub)
        grid = (pl.cdiv(rows, tm),)

    # Alias input 0 to the output only when we padded: the padded slab is a
    # fresh temporary, so aliasing is genuinely free (no defensive copy).
    # Safe because the op is elementwise and input-0/output index maps are
    # identical (block i is read before it is written).
    alias = {0: 0} if padded else {}

    cost = pl.CostEstimate(
        flops=2 * n,
        transcendentals=0,
        bytes_accessed=3 * n_pad * itemsize,
    )

    out = pl.pallas_call(
        _add_relu_kernel,
        out_shape=jax.ShapeDtypeStruct((rows, _LANES), dtype),
        grid=grid,
        in_specs=[
            pl.BlockSpec((tm, _LANES), lambda i: (i, 0)),
            pl.BlockSpec((tm, _LANES), lambda i: (i, 0)),
        ],
        out_specs=pl.BlockSpec((tm, _LANES), lambda i: (i, 0)),
        input_output_aliases=alias,
        cost_estimate=cost,
        compiler_params=pltpu.CompilerParams(
            dimension_semantics=("parallel",)
        ),
    )(a2, b2)

    if padded:
        out = out.reshape(-1)[:n]
    return out.reshape(orig_shape)


add_relu = jax.jit(_add_relu_impl)


if __name__ == "__main__":
    key = jax.random.PRNGKey(0)
    k1, k2, k3, k4 = jax.random.split(key, 4)

    # Module's actual shape (1, 896, 14, 14): 175,616 elements, already
    # 128-aligned -> Pallas path with no padding and a balanced 2-block grid.
    shape = (1, 896, 14, 14)
    x121 = jax.random.normal(k1, shape, dtype=jnp.float32)
    x135 = jax.random.normal(k2, shape, dtype=jnp.float32)
    y = add_relu(x121, x135)
    jax.block_until_ready(y)
    ref = jnp.maximum(x121 + x135, 0.0)
    assert y.shape == shape
    assert jnp.allclose(y, ref), "mismatch vs reference (kernel path)"

    # Small shape exercises the size-based XLA fallback path.
    small_shape = (2, 4, 16, 16)
    s121 = jax.random.normal(k3, small_shape, dtype=jnp.float32)
    s135 = jax.random.normal(k4, small_shape, dtype=jnp.float32)
    ys = add_relu(s121, s135)
    jax.block_until_ready(ys)
    refs = jnp.maximum(s121 + s135, 0.0)
    assert ys.shape == small_shape
    assert jnp.allclose(ys, refs), "mismatch vs reference (fallback path)"

    print("KERNEL_OK")
</pallas_src>

<mosaic_0001>
module attributes {stable_mosaic.version = 11 : i64} {
  func.func @_add_relu_kernel(%arg0: i32, %arg1: memref<688x128xf32, #tpu.memory_space<vmem>>, %arg2: memref<688x128xf32, #tpu.memory_space<vmem>>, %arg3: memref<688x128xf32, #tpu.memory_space<vmem>>) attributes {dimension_semantics = [#tpu.dimension_semantics<parallel>], iteration_bounds = array<i64: 2>, scalar_prefetch = 0 : i64, scratch_operands = 0 : i64, tpu.core_type = #tpu.core_type<tc>, window_params = [{transform_indices = @transform_0, window_bounds = array<i64: 688, 128>}, {transform_indices = @transform_1, window_bounds = array<i64: 688, 128>}, {transform_indices = @transform_2, window_bounds = array<i64: 688, 128>}]} {
    %c0 = arith.constant 0 : index
    %c0_0 = arith.constant 0 : index
    %0 = vector.load %arg1[%c0, %c0_0] : memref<688x128xf32, #tpu.memory_space<vmem>>, vector<688x128xf32>
    %c0_1 = arith.constant 0 : index
    %c0_2 = arith.constant 0 : index
    %1 = vector.load %arg2[%c0_1, %c0_2] : memref<688x128xf32, #tpu.memory_space<vmem>>, vector<688x128xf32>
    %2 = arith.addf %0, %1 : vector<688x128xf32>
    %cst = arith.constant 0.000000e+00 : f32
    %3 = vector.broadcast %cst : f32 to vector<688x128xf32>
    %4 = arith.maximumf %2, %3 : vector<688x128xf32>
    %c0_3 = arith.constant 0 : index
    %c0_4 = arith.constant 0 : index
    %5 = vector.load %arg3[%c0_3, %c0_4] : memref<688x128xf32, #tpu.memory_space<vmem>>, vector<688x128xf32>
    tpu.vector_store %arg3[%c0_3, %c0_4], %4 {strides = array<i32>} : memref<688x128xf32, #tpu.memory_space<vmem>>, vector<688x128xf32>,
    return
  }
  func.func @transform_0(%arg0: i32) -> (i32, i32) {
    %c0_i32 = arith.constant 0 : i32
    %c0_i32_0 = arith.constant 0 : i32
    return %arg0, %c0_i32 : i32, i32
  }
  func.func @transform_1(%arg0: i32) -> (i32, i32) {
    %c0_i32 = arith.constant 0 : i32
    %c0_i32_0 = arith.constant 0 : i32
    return %arg0, %c0_i32 : i32, i32
  }
  func.func @transform_2(%arg0: i32) -> (i32, i32) {
    %c0_i32 = arith.constant 0 : i32
    %c0_i32_0 = arith.constant 0 : i32
    return %arg0, %c0_i32 : i32, i32
  }
}

</mosaic_0001>

<bundles_post_ra>
// kernel: _add_relu_impl.1
= control target key start
LH: loop header
LB: loop body
LE: loop exit
PB: predicated region body
PF: predicated region fallthrough
CT: control target
= control target key end

     0   :  { %s708_s9 = smov 0   ;;  %s992_s0 = inlined_call_operand.vmem [shape: f32[1372,128], index: 0, kind: input, shape index: {}]   ;;  %s993_s1 = inlined_call_operand.vmem [shape: f32[1372,128], index: 1, kind: input, shape index: {}]   ;;  %s994_s2 = inlined_call_operand.vmem [shape: f32[1372,128], index: 2, kind: output, shape index: {}]  }
   0x1 LB: > { %s667_s10 = sadd.s32 4294967295, %s691_s9   ;;  %p671_p0 = scmp.ge.s32.totalorder %s691_s9, 1  ;;  %s691_s9 = sphi %s708_s9, %s12_s9  }
   0x2   : > { %p124_p1 = scmp.lt.s32.totalorder %s691_s9, 3 }
   0x4   : > { %p125_p2 = pnand %p671_p0, %p124_p1 }
   0x5   : > { %s151_s11 = smul.u32 (!%p125_p2), 86, %s667_s10 }
   0x6   : > { %128 = sbr.rel (%p125_p2) target bundleno = 88 (0x58), region = 28 }
   0x7   : > { %p152_p3 = scmp.lt.s32.totalorder (!%p125_p2), %s151_s11, 171 }
   0xd   : > { %s996_s11 = smov (!%p152_p3, %s151_s11), 171 }
   0xe   : > { %s672_s12 = sshll.u32 %s996_s11, 3 }
   0xf   : > { %s719_s15 = scalar_lea.vmem %s992_s0, %s672_s12  ;;  %s724_s18 = scalar_lea.vmem %s993_s1, %s672_s12 }
  0x10   : > { %v169_v0 = vld [vmem:[%s719_s15] sm:$0xff]  ;;  %v170_v2 = vld [vmem:[%s719_s15 + $0x8] sm:$0xff]  ;;  %v171_v5 = vld [vmem:[%s719_s15 + $0x10] sm:$0xff]  ;;  %s735_s21 = scalar_lea.vmem %s994_s2, %s672_s12 }
  0x11   : > { %v255_v1 = vld [vmem:[%s724_s18] sm:$0xff]  ;;  %v256_v4 = vld [vmem:[%s724_s18 + $0x8] sm:$0xff]  ;;  %v257_v6 = vld [vmem:[%s724_s18 + $0x10] sm:$0xff] }
  0x12   : > { %v341_v3 = vadd.f32 %v255_v1, %v169_v0  ;;  %v342_v7 = vadd.f32 %v256_v4, %v170_v2  ;;  %v343_v8 = vadd.f32 %v257_v6, %v171_v5  ;;  %v172_v9 = vld [vmem:[%s719_s15 + $0x18] sm:$0xff]  ;;  %v173_v11 = vld [vmem:[%s719_s15 + $0x20] sm:$0xff]  ;;  %v174_v15 = vld [vmem:[%s719_s15 + $0x28] sm:$0xff] }
  0x13   : > { %v258_v10 = vld [vmem:[%s724_s18 + $0x18] sm:$0xff]  ;;  %v259_v14 = vld [vmem:[%s724_s18 + $0x20] sm:$0xff]  ;;  %v260_v16 = vld [vmem:[%s724_s18 + $0x28] sm:$0xff] }
  0x14   : > { %v427_v12 = vmax.f32 %v341_v3, 0.0  ;;  %v344_v13 = vadd.f32 %v258_v10, %v172_v9  ;;  %v428_v17 = vmax.f32 %v342_v7, 0.0  ;;  %v429_v18 = vmax.f32 %v343_v8, 0.0  ;;  %v175_v21 = vld [vmem:[%s719_s15 + $0x30] sm:$0xff]  ;;  %v176_v23 = vld [vmem:[%s719_s15 + $0x38] sm:$0xff]  ;;  %v177_v27 = vld [vmem:[%s719_s15 + $0x40] sm:$0xff] }
  0x15   : > { %v345_v19 = vadd.f32 %v259_v14, %v173_v11  ;;  %v346_v20 = vadd.f32 %v260_v16, %v174_v15  ;;  %v261_v22 = vld [vmem:[%s724_s18 + $0x30] sm:$0xff]  ;;  %v262_v26 = vld [vmem:[%s724_s18 + $0x38] sm:$0xff]  ;;  %v263_v28 = vld [vmem:[%s724_s18 + $0x40] sm:$0xff] }
  0x16   : > { %513 = vst [vmem:[%s735_s21] sm:$0xff] %v427_v12  ;;  %v430_v24 = vmax.f32 %v344_v13, 0.0  ;;  %v347_v25 = vadd.f32 %v261_v22, %v175_v21  ;;  %514 = vst [vmem:[%s735_s21 + $0x8] sm:$0xff] %v428_v17  ;;  %v348_v31 = vadd.f32 %v262_v26, %v176_v23  ;;  %v349_v32 = vadd.f32 %v263_v28, %v177_v27  ;;  %v178_v33 = vld [vmem:[%s719_s15 + $0x48] sm:$0xff]  ;;  %v179_v35 = vld [vmem:[%s719_s15 + $0x50] sm:$0xff] }
  0x17   : > { %515 = vst [vmem:[%s735_s21 + $0x10] sm:$0xff] %v429_v18  ;;  %v431_v29 = vmax.f32 %v345_v19, 0.0  ;;  %v432_v30 = vmax.f32 %v346_v20, 0.0  ;;  %v264_v34 = vld [vmem:[%s724_s18 + $0x48] sm:$0xff]  ;;  %v265_v38 = vld [vmem:[%s724_s18 + $0x50] sm:$0xff]  ;;  %v180_v39 = vld [vmem:[%s719_s15 + $0x58] sm:$0xff] }
  0x18   : > { %516 = vst [vmem:[%s735_s21 + $0x18] sm:$0xff] %v430_v24  ;;  %v433_v36 = vmax.f32 %v347_v25, 0.0  ;;  %v350_v37 = vadd.f32 %v264_v34, %v178_v33  ;;  %v266_v40 = vld [vmem:[%s724_s18 + $0x58] sm:$0xff]  ;;  %v434_v41 = vmax.f32 %v348_v31, 0.0  ;;  %v435_v42 = vmax.f32 %v349_v32, 0.0  ;;  %v181_v45 = vld [vmem:[%s719_s15 + $0x60] sm:$0xff] }
  0x19   : > { %517 = vst [vmem:[%s735_s21 + $0x20] sm:$0xff] %v431_v29  ;;  %518 = vst [vmem:[%s735_s21 + $0x28] sm:$0xff] %v432_v30  ;;  %v351_v43 = vadd.f32 %v265_v38, %v179_v35  ;;  %v352_v44 = vadd.f32 %v266_v40, %v180_v39  ;;  %v267_v46 = vld [vmem:[%s724_s18 + $0x60] sm:$0xff]  ;;  %v182_v47 = vld [vmem:[%s719_s15 + $0x68] sm:$0xff] }
  0x1a   : > { %519 = vst [vmem:[%s735_s21 + $0x30] sm:$0xff] %v433_v36  ;;  %v436_v48 = vmax.f32 %v350_v37, 0.0  ;;  %v353_v49 = vadd.f32 %v267_v46, %v181_v45  ;;  %v268_v50 = vld [vmem:[%s724_s18 + $0x68] sm:$0xff]  ;;  %v183_v51 = vld [vmem:[%s719_s15 + $0x70] sm:$0xff]  ;;  %520 = vst [vmem:[%s735_s21 + $0x38] sm:$0xff] %v434_v41 }
  0x1b   : > { %v269_v52 = vld [vmem:[%s724_s18 + $0x70] sm:$0xff]  ;;  %521 = vst [vmem:[%s735_s21 + $0x40] sm:$0xff] %v435_v42  ;;  %v437_v53 = vmax.f32 %v351_v43, 0.0  ;;  %v438_v54 = vmax.f32 %v352_v44, 0.0  ;;  %v354_v55 = vadd.f32 %v268_v50, %v182_v47  ;;  %v184_v57 = vld [vmem:[%s719_s15 + $0x78] sm:$0xff]  ;;  %v185_v59 = vld [vmem:[%s719_s15 + $0x80] sm:$0xff] }
  0x1c   : > { %v355_v56 = vadd.f32 %v269_v52, %v183_v51  ;;  %v270_v58 = vld [vmem:[%s724_s18 + $0x78] sm:$0xff]  ;;  %522 = vst [vmem:[%s735_s21 + $0x48] sm:$0xff] %v436_v48  ;;  %v439_v60 = vmax.f32 %v353_v49, 0.0  ;;  %v271_v62 = vld [vmem:[%s724_s18 + $0x80] sm:$0xff]  ;;  %v186_v63 = vld [vmem:[%s719_s15 + $0x88] sm:$0xff] }
  0x1d   : > { %v356_v61 = vadd.f32 %v270_v58, %v184_v57  ;;  %v272_v0 = vld [vmem:[%s724_s18 + $0x88] sm:$0xff]  ;;  %523 = vst [vmem:[%s735_s21 + $0x50] sm:$0xff] %v437_v53  ;;  %524 = vst [vmem:[%s735_s21 + $0x58] sm:$0xff] %v438_v54  ;;  %v440_v1 = vmax.f32 %v354_v55, 0.0  ;;  %v357_v3 = vadd.f32 %v271_v62, %v185_v59  ;;  %v187_v5 = vld [vmem:[%s719_s15 + $0x90] sm:$0xff] }
  0x1e   : > { %v441_v2 = vmax.f32 %v355_v56, 0.0  ;;  %v358_v4 = vadd.f32 %v272_v0, %v186_v63  ;;  %v273_v6 = vld [vmem:[%s724_s18 + $0x90] sm:$0xff]  ;;  %v188_v7 = vld [vmem:[%s719_s15 + $0x98] sm:$0xff]  ;;  %525 = vst [vmem:[%s735_s21 + $0x60] sm:$0xff] %v439_v60  ;;  %v189_v11 = vld [vmem:[%s719_s15 + $0xa0] sm:$0xff] }
  0x1f   : > { %v442_v8 = vmax.f32 %v356_v61, 0.0  ;;  %v359_v9 = vadd.f32 %v273_v6, %v187_v5  ;;  %v274_v10 = vld [vmem:[%s724_s18 + $0x98] sm:$0xff]  ;;  %v275_v12 = vld [vmem:[%s724_s18 + $0xa0] sm:$0xff]  ;;  %526 = vst [vmem:[%s735_s21 + $0x68] sm:$0xff] %v440_v1  ;;  %v443_v13 = vmax.f32 %v357_v3, 0.0  ;;  %v190_v17 = vld [vmem:[%s719_s15 + $0xa8] sm:$0xff] }
  0x20   : > { %527 = vst [vmem:[%s735_s21 + $0x70] sm:$0xff] %v441_v2  ;;  %v444_v14 = vmax.f32 %v358_v4, 0.0  ;;  %v360_v15 = vadd.f32 %v274_v10, %v188_v7  ;;  %v361_v16 = vadd.f32 %v275_v12, %v189_v11  ;;  %v276_v18 = vld [vmem:[%s724_s18 + $0xa8] sm:$0xff]  ;;  %v191_v19 = vld [vmem:[%s719_s15 + $0xb0] sm:$0xff]  ;;  %v192_v23 = vld [vmem:[%s719_s15 + $0xb8] sm:$0xff] }
  0x21   : > { %528 = vst [vmem:[%s735_s21 + $0x78] sm:$0xff] %v442_v8  ;;  %v445_v20 = vmax.f32 %v359_v9, 0.0  ;;  %v362_v21 = vadd.f32 %v276_v18, %v190_v17  ;;  %v277_v22 = vld [vmem:[%s724_s18 + $0xb0] sm:$0xff]  ;;  %v278_v24 = vld [vmem:[%s724_s18 + $0xb8] sm:$0xff]  ;;  %529 = vst [vmem:[%s735_s21 + $0x80] sm:$0xff] %v443_v13 }
  0x22   : > { %530 = vst [vmem:[%s735_s21 + $0x88] sm:$0xff] %v444_v14  ;;  %v446_v25 = vmax.f32 %v360_v15, 0.0  ;;  %v447_v26 = vmax.f32 %v361_v16, 0.0  ;;  %v363_v27 = vadd.f32 %v277_v22, %v191_v19  ;;  %v364_v28 = vadd.f32 %v278_v24, %v192_v23  ;;  %v193_v29 = vld [vmem:[%s719_s15 + $0xc0] sm:$0xff]  ;;  %v194_v31 = vld [vmem:[%s719_s15 + $0xc8] sm:$0xff]  ;;  %v195_v35 = vld [vmem:[%s719_s15 + $0xd0] sm:$0xff] }
  0x23   : > { %v279_v30 = vld [vmem:[%s724_s18 + $0xc0] sm:$0xff]  ;;  %531 = vst [vmem:[%s735_s21 + $0x90] sm:$0xff] %v445_v20  ;;  %v448_v32 = vmax.f32 %v362_v21, 0.0  ;;  %v280_v34 = vld [vmem:[%s724_s18 + $0xc8] sm:$0xff]  ;;  %v281_v36 = vld [vmem:[%s724_s18 + $0xd0] sm:$0xff] }
  0x24   : > { %v365_v33 = vadd.f32 %v279_v30, %v193_v29  ;;  %532 = vst [vmem:[%s735_s21 + $0x98] sm:$0xff] %v446_v25  ;;  %533 = vst [vmem:[%s735_s21 + $0xa0] sm:$0xff] %v447_v26  ;;  %v449_v37 = vmax.f32 %v363_v27, 0.0  ;;  %v450_v38 = vmax.f32 %v364_v28, 0.0  ;;  %v366_v39 = vadd.f32 %v280_v34, %v194_v31  ;;  %v196_v41 = vld [vmem:[%s719_s15 + $0xd8] sm:$0xff]  ;;  %v197_v43 = vld [vmem:[%s719_s15 + $0xe0] sm:$0xff] }
  0x25   : > { %v367_v40 = vadd.f32 %v281_v36, %v195_v35  ;;  %v282_v42 = vld [vmem:[%s724_s18 + $0xd8] sm:$0xff]  ;;  %534 = vst [vmem:[%s735_s21 + $0xa8] sm:$0xff] %v448_v32  ;;  %v283_v46 = vld [vmem:[%s724_s18 + $0xe0] sm:$0xff]  ;;  %v198_v47 = vld [vmem:[%s719_s15 + $0xe8] sm:$0xff] }
  0x26   : > { %v451_v44 = vmax.f32 %v365_v33, 0.0  ;;  %v368_v45 = vadd.f32 %v282_v42, %v196_v41  ;;  %v284_v48 = vld [vmem:[%s724_s18 + $0xe8] sm:$0xff]  ;;  %535 = vst [vmem:[%s735_s21 + $0xb0] sm:$0xff] %v449_v37  ;;  %536 = vst [vmem:[%s735_s21 + $0xb8] sm:$0xff] %v450_v38  ;;  %v452_v49 = vmax.f32 %v366_v39, 0.0  ;;  %v369_v51 = vadd.f32 %v283_v46, %v197_v43  ;;  %v199_v53 = vld [vmem:[%s719_s15 + $0xf0] sm:$0xff] }
  0x27   : > { %v453_v50 = vmax.f32 %v367_v40, 0.0  ;;  %v370_v52 = vadd.f32 %v284_v48, %v198_v47  ;;  %v285_v54 = vld [vmem:[%s724_s18 + $0xf0] sm:$0xff]  ;;  %v200_v55 = vld [vmem:[%s719_s15 + $0xf8] sm:$0xff]  ;;  %v201_v59 = vld [vmem:[%s719_s15 + $0x100] sm:$0xff] }
  0x28   : > { %537 = vst [vmem:[%s735_s21 + $0xc0] sm:$0xff] %v451_v44  ;;  %v454_v56 = vmax.f32 %v368_v45, 0.0  ;;  %v371_v57 = vadd.f32 %v285_v54, %v199_v53  ;;  %v286_v58 = vld [vmem:[%s724_s18 + $0xf8] sm:$0xff]  ;;  %v287_v60 = vld [vmem:[%s724_s18 + $0x100] sm:$0xff]  ;;  %538 = vst [vmem:[%s735_s21 + $0xc8] sm:$0xff] %v452_v49  ;;  %v455_v61 = vmax.f32 %v369_v51, 0.0 }
  0x29   : > { %539 = vst [vmem:[%s735_s21 + $0xd0] sm:$0xff] %v453_v50  ;;  %v456_v62 = vmax.f32 %v370_v52, 0.0  ;;  %v372_v63 = vadd.f32 %v286_v58, %v200_v55  ;;  %v373_v0 = vadd.f32 %v287_v60, %v201_v59  ;;  %v202_v1 = vld [vmem:[%s719_s15 + $0x108] sm:$0xff]  ;;  %v203_v3 = vld [vmem:[%s719_s15 + $0x110] sm:$0xff]  ;;  %v204_v7 = vld [vmem:[%s719_s15 + $0x118] sm:$0xff] }
  0x2a   : > { %v288_v2 = vld [vmem:[%s724_s18 + $0x108] sm:$0xff]  ;;  %540 = vst [vmem:[%s735_s21 + $0xd8] sm:$0xff] %v454_v56  ;;  %v457_v4 = vmax.f32 %v371_v57, 0.0  ;;  %v289_v6 = vld [vmem:[%s724_s18 + $0x110] sm:$0xff]  ;;  %v290_v8 = vld [vmem:[%s724_s18 + $0x118] sm:$0xff] }
  0x2b   : > { %v374_v5 = vadd.f32 %v288_v2, %v202_v1  ;;  %541 = vst [vmem:[%s735_s21 + $0xe0] sm:$0xff] %v455_v61  ;;  %542 = vst [vmem:[%s735_s21 + $0xe8] sm:$0xff] %v456_v62  ;;  %v458_v9 = vmax.f32 %v372_v63, 0.0  ;;  %v459_v10 = vmax.f32 %v373_v0, 0.0  ;;  %v375_v11 = vadd.f32 %v289_v6, %v203_v3  ;;  %v205_v13 = vld [vmem:[%s719_s15 + $0x120] sm:$0xff]  ;;  %v206_v15 = vld [vmem:[%s719_s15 + $0x128] sm:$0xff] }
  0x2c   : > { %v376_v12 = vadd.f32 %v290_v8, %v204_v7  ;;  %v291_v14 = vld [vmem:[%s724_s18 + $0x120] sm:$0xff]  ;;  %543 = vst [vmem:[%s735_s21 + $0xf0] sm:$0xff] %v457_v4  ;;  %v292_v18 = vld [vmem:[%s724_s18 + $0x128] sm:$0xff]  ;;  %v207_v19 = vld [vmem:[%s719_s15 + $0x130] sm:$0xff] }
  0x2d   : > { %v460_v16 = vmax.f32 %v374_v5, 0.0  ;;  %v377_v17 = vadd.f32 %v291_v14, %v205_v13  ;;  %v293_v20 = vld [vmem:[%s724_s18 + $0x130] sm:$0xff]  ;;  %544 = vst [vmem:[%s735_s21 + $0xf8] sm:$0xff] %v458_v9  ;;  %545 = vst [vmem:[%s735_s21 + $0x100] sm:$0xff] %v459_v10  ;;  %v461_v21 = vmax.f32 %v375_v11, 0.0  ;;  %v378_v23 = vadd.f32 %v292_v18, %v206_v15  ;;  %v208_v25 = vld [vmem:[%s719_s15 + $0x138] sm:$0xff] }
  0x2e   : > { %v462_v22 = vmax.f32 %v376_v12, 0.0  ;;  %v379_v24 = vadd.f32 %v293_v20, %v207_v19  ;;  %v294_v26 = vld [vmem:[%s724_s18 + $0x138] sm:$0xff]  ;;  %v209_v27 = vld [vmem:[%s719_s15 + $0x140] sm:$0xff]  ;;  %v210_v31 = vld [vmem:[%s719_s15 + $0x148] sm:$0xff] }
  0x2f   : > { %546 = vst [vmem:[%s735_s21 + $0x108] sm:$0xff] %v460_v16  ;;  %v463_v28 = vmax.f32 %v377_v17, 0.0  ;;  %v380_v29 = vadd.f32 %v294_v26, %v208_v25  ;;  %v295_v30 = vld [vmem:[%s724_s18 + $0x140] sm:$0xff]  ;;  %v296_v32 = vld [vmem:[%s724_s18 + $0x148] sm:$0xff]  ;;  %547 = vst [vmem:[%s735_s21 + $0x110] sm:$0xff] %v461_v21  ;;  %v464_v33 = vmax.f32 %v378_v23, 0.0 }
  0x30   : > { %548 = vst [vmem:[%s735_s21 + $0x118] sm:$0xff] %v462_v22  ;;  %v465_v34 = vmax.f32 %v379_v24, 0.0  ;;  %v381_v35 = vadd.f32 %v295_v30, %v209_v27  ;;  %v382_v36 = vadd.f32 %v296_v32, %v210_v31  ;;  %v211_v37 = vld [vmem:[%s719_s15 + $0x150] sm:$0xff]  ;;  %v212_v39 = vld [vmem:[%s719_s15 + $0x158] sm:$0xff]  ;;  %v213_v43 = vld [vmem:[%s719_s15 + $0x160] sm:$0xff] }
  0x31   : > { %v297_v38 = vld [vmem:[%s724_s18 + $0x150] sm:$0xff]  ;;  %549 = vst [vmem:[%s735_s21 + $0x120] sm:$0xff] %v463_v28  ;;  %v466_v40 = vmax.f32 %v380_v29, 0.0  ;;  %v298_v42 = vld [vmem:[%s724_s18 + $0x158] sm:$0xff]  ;;  %v299_v44 = vld [vmem:[%s724_s18 + $0x160] sm:$0xff] }
  0x32   : > { %v383_v41 = vadd.f32 %v297_v38, %v211_v37  ;;  %550 = vst [vmem:[%s735_s21 + $0x128] sm:$0xff] %v464_v33  ;;  %551 = vst [vmem:[%s735_s21 + $0x130] sm:$0xff] %v465_v34  ;;  %v467_v45 = vmax.f32 %v381_v35, 0.0  ;;  %v468_v46 = vmax.f32 %v382_v36, 0.0  ;;  %v384_v47 = vadd.f32 %v298_v42, %v212_v39  ;;  %v214_v49 = vld [vmem:[%s719_s15 + $0x168] sm:$0xff]  ;;  %v215_v51 = vld [vmem:[%s719_s15 + $0x170] sm:$0xff] }
  0x33   : > { %v385_v48 = vadd.f32 %v299_v44, %v213_v43  ;;  %v300_v50 = vld [vmem:[%s724_s18 + $0x168] sm:$0xff]  ;;  %552 = vst [vmem:[%s735_s21 + $0x138] sm:$0xff] %v466_v40  ;;  %v301_v54 = vld [vmem:[%s724_s18 + $0x170] sm:$0xff]  ;;  %v216_v55 = vld [vmem:[%s719_s15 + $0x178] sm:$0xff] }
  0x34   : > { %v469_v52 = vmax.f32 %v383_v41, 0.0  ;;  %v386_v53 = vadd.f32 %v300_v50, %v214_v49  ;;  %v302_v56 = vld [vmem:[%s724_s18 + $0x178] sm:$0xff]  ;;  %553 = vst [vmem:[%s735_s21 + $0x140] sm:$0xff] %v467_v45  ;;  %554 = vst [vmem:[%s735_s21 + $0x148] sm:$0xff] %v468_v46  ;;  %v470_v57 = vmax.f32 %v384_v47, 0.0  ;;  %v387_v59 = vadd.f32 %v301_v54, %v215_v51  ;;  %v217_v61 = vld [vmem:[%s719_s15 + $0x180] sm:$0xff] }
  0x35   : > { %v471_v58 = vmax.f32 %v385_v48, 0.0  ;;  %v388_v60 = vadd.f32 %v302_v56, %v216_v55  ;;  %v303_v62 = vld [vmem:[%s724_s18 + $0x180] sm:$0xff]  ;;  %v218_v63 = vld [vmem:[%s719_s15 + $0x188] sm:$0xff]  ;;  %v219_v3 = vld [vmem:[%s719_s15 + $0x190] sm:$0xff] }
  0x36   : > { %555 = vst [vmem:[%s735_s21 + $0x150] sm:$0xff] %v469_v52  ;;  %v472_v0 = vmax.f32 %v386_v53, 0.0  ;;  %v389_v1 = vadd.f32 %v303_v62, %v217_v61  ;;  %v304_v2 = vld [vmem:[%s724_s18 + $0x188] sm:$0xff]  ;;  %v305_v4 = vld [vmem:[%s724_s18 + $0x190] sm:$0xff]  ;;  %556 = vst [vmem:[%s735_s21 + $0x158] sm:$0xff] %v470_v57  ;;  %v473_v5 = vmax.f32 %v387_v59, 0.0 }
  0x37   : > { %557 = vst [vmem:[%s735_s21 + $0x160] sm:$0xff] %v471_v58  ;;  %v474_v6 = vmax.f32 %v388_v60, 0.0  ;;  %v390_v7 = vadd.f32 %v304_v2, %v218_v63  ;;  %v391_v8 = vadd.f32 %v305_v4, %v219_v3  ;;  %v220_v9 = vld [vmem:[%s719_s15 + $0x198] sm:$0xff]  ;;  %v221_v11 = vld [vmem:[%s719_s15 + $0x1a0] sm:$0xff]  ;;  %v222_v15 = vld [vmem:[%s719_s15 + $0x1a8] sm:$0xff] }
  0x38   : > { %v306_v10 = vld [vmem:[%s724_s18 + $0x198] sm:$0xff]  ;;  %558 = vst [vmem:[%s735_s21 + $0x168] sm:$0xff] %v472_v0  ;;  %v475_v12 = vmax.f32 %v389_v1, 0.0  ;;  %v307_v14 = vld [vmem:[%s724_s18 + $0x1a0] sm:$0xff]  ;;  %v308_v16 = vld [vmem:[%s724_s18 + $0x1a8] sm:$0xff] }
  0x39   : > { %v392_v13 = vadd.f32 %v306_v10, %v220_v9  ;;  %559 = vst [vmem:[%s735_s21 + $0x170] sm:$0xff] %v473_v5  ;;  %560 = vst [vmem:[%s735_s21 + $0x178] sm:$0xff] %v474_v6  ;;  %v476_v17 = vmax.f32 %v390_v7, 0.0  ;;  %v477_v18 = vmax.f32 %v391_v8, 0.0  ;;  %v393_v19 = vadd.f32 %v307_v14, %v221_v11  ;;  %v223_v21 = vld [vmem:[%s719_s15 + $0x1b0] sm:$0xff]  ;;  %v224_v23 = vld [vmem:[%s719_s15 + $0x1b8] sm:$0xff] }
  0x3a   : > { %v394_v20 = vadd.f32 %v308_v16, %v222_v15  ;;  %v309_v22 = vld [vmem:[%s724_s18 + $0x1b0] sm:$0xff]  ;;  %561 = vst [vmem:[%s735_s21 + $0x180] sm:$0xff] %v475_v12  ;;  %v310_v26 = vld [vmem:[%s724_s18 + $0x1b8] sm:$0xff]  ;;  %v225_v27 = vld [vmem:[%s719_s15 + $0x1c0] sm:$0xff] }
  0x3b   : > { %v478_v24 = vmax.f32 %v392_v13, 0.0  ;;  %v395_v25 = vadd.f32 %v309_v22, %v223_v21  ;;  %v311_v28 = vld [vmem:[%s724_s18 + $0x1c0] sm:$0xff]  ;;  %562 = vst [vmem:[%s735_s21 + $0x188] sm:$0xff] %v476_v17  ;;  %563 = vst [vmem:[%s735_s21 + $0x190] sm:$0xff] %v477_v18  ;;  %v479_v29 = vmax.f32 %v393_v19, 0.0  ;;  %v396_v31 = vadd.f32 %v310_v26, %v224_v23  ;;  %v226_v33 = vld [vmem:[%s719_s15 + $0x1c8] sm:$0xff] }
  0x3c   : > { %v480_v30 = vmax.f32 %v394_v20, 0.0  ;;  %v397_v32 = vadd.f32 %v311_v28, %v225_v27  ;;  %v312_v34 = vld [vmem:[%s724_s18 + $0x1c8] sm:$0xff]  ;;  %v227_v35 = vld [vmem:[%s719_s15 + $0x1d0] sm:$0xff]  ;;  %v228_v39 = vld [vmem:[%s719_s15 + $0x1d8] sm:$0xff] }
  0x3d   : > { %564 = vst [vmem:[%s735_s21 + $0x198] sm:$0xff] %v478_v24  ;;  %v481_v36 = vmax.f32 %v395_v25, 0.0  ;;  %v398_v37 = vadd.f32 %v312_v34, %v226_v33  ;;  %v313_v38 = vld [vmem:[%s724_s18 + $0x1d0] sm:$0xff]  ;;  %v314_v40 = vld [vmem:[%s724_s18 + $0x1d8] sm:$0xff]  ;;  %565 = vst [vmem:[%s735_s21 + $0x1a0] sm:$0xff] %v479_v29  ;;  %v482_v41 = vmax.f32 %v396_v31, 0.0 }
  0x3e   : > { %566 = vst [vmem:[%s735_s21 + $0x1a8] sm:$0xff] %v480_v30  ;;  %v483_v42 = vmax.f32 %v397_v32, 0.0  ;;  %v399_v43 = vadd.f32 %v313_v38, %v227_v35  ;;  %v400_v44 = vadd.f32 %v314_v40, %v228_v39  ;;  %v229_v45 = vld [vmem:[%s719_s15 + $0x1e0] sm:$0xff]  ;;  %v230_v47 = vld [vmem:[%s719_s15 + $0x1e8] sm:$0xff]  ;;  %v231_v51 = vld [vmem:[%s719_s15 + $0x1f0] sm:$0xff] }
  0x3f   : > { %v315_v46 = vld [vmem:[%s724_s18 + $0x1e0] sm:$0xff]  ;;  %567 = vst [vmem:[%s735_s21 + $0x1b0] sm:$0xff] %v481_v36  ;;  %v484_v48 = vmax.f32 %v398_v37, 0.0  ;;  %v316_v50 = vld [vmem:[%s724_s18 + $0x1e8] sm:$0xff]  ;;  %v317_v52 = vld [vmem:[%s724_s18 + $0x1f0] sm:$0xff] }
  0x40   : > { %v401_v49 = vadd.f32 %v315_v46, %v229_v45  ;;  %568 = vst [vmem:[%s735_s21 + $0x1b8] sm:$0xff] %v482_v41  ;;  %569 = vst [vmem:[%s735_s21 + $0x1c0] sm:$0xff] %v483_v42  ;;  %v485_v53 = vmax.f32 %v399_v43, 0.0  ;;  %v486_v54 = vmax.f32 %v400_v44, 0.0  ;;  %v402_v55 = vadd.f32 %v316_v50, %v230_v47  ;;  %v232_v57 = vld [vmem:[%s719_s15 + $0x1f8] sm:$0xff]  ;;  %v233_v59 = vld [vmem:[%s719_s15 + $0x200] sm:$0xff] }
  0x41   : > { %v403_v56 = vadd.f32 %v317_v52, %v231_v51  ;;  %v318_v58 = vld [vmem:[%s724_s18 + $0x1f8] sm:$0xff]  ;;  %570 = vst [vmem:[%s735_s21 + $0x1c8] sm:$0xff] %v484_v48  ;;  %v319_v62 = vld [vmem:[%s724_s18 + $0x200] sm:$0xff]  ;;  %v234_v63 = vld [vmem:[%s719_s15 + $0x208] sm:$0xff] }
  0x42   : > { %v487_v60 = vmax.f32 %v401_v49, 0.0  ;;  %v404_v61 = vadd.f32 %v318_v58, %v232_v57  ;;  %v320_v0 = vld [vmem:[%s724_s18 + $0x208] sm:$0xff]  ;;  %571 = vst [vmem:[%s735_s21 + $0x1d0] sm:$0xff] %v485_v53  ;;  %572 = vst [vmem:[%s735_s21 + $0x1d8] sm:$0xff] %v486_v54  ;;  %v488_v1 = vmax.f32 %v402_v55, 0.0  ;;  %v405_v3 = vadd.f32 %v319_v62, %v233_v59  ;;  %v235_v5 = vld [vmem:[%s719_s15 + $0x210] sm:$0xff] }
  0x43   : > { %v489_v2 = vmax.f32 %v403_v56, 0.0  ;;  %v406_v4 = vadd.f32 %v320_v0, %v234_v63  ;;  %v321_v6 = vld [vmem:[%s724_s18 + $0x210] sm:$0xff]  ;;  %v236_v7 = vld [vmem:[%s719_s15 + $0x218] sm:$0xff]  ;;  %v237_v11 = vld [vmem:[%s719_s15 + $0x220] sm:$0xff] }
  0x44   : > { %573 = vst [vmem:[%s735_s21 + $0x1e0] sm:$0xff] %v487_v60  ;;  %v490_v8 = vmax.f32 %v404_v61, 0.0  ;;  %v407_v9 = vadd.f32 %v321_v6, %v235_v5  ;;  %v322_v10 = vld [vmem:[%s724_s18 + $0x218] sm:$0xff]  ;;  %v323_v12 = vld [vmem:[%s724_s18 + $0x220] sm:$0xff]  ;;  %574 = vst [vmem:[%s735_s21 + $0x1e8] sm:$0xff] %v488_v1  ;;  %v491_v13 = vmax.f32 %v405_v3, 0.0 }
  0x45   : > { %575 = vst [vmem:[%s735_s21 + $0x1f0] sm:$0xff] %v489_v2  ;;  %v492_v14 = vmax.f32 %v406_v4, 0.0  ;;  %v408_v15 = vadd.f32 %v322_v10, %v236_v7  ;;  %v409_v16 = vadd.f32 %v323_v12, %v237_v11  ;;  %v238_v17 = vld [vmem:[%s719_s15 + $0x228] sm:$0xff]  ;;  %v239_v19 = vld [vmem:[%s719_s15 + $0x230] sm:$0xff]  ;;  %v240_v23 = vld [vmem:[%s719_s15 + $0x238] sm:$0xff] }
  0x46   : > { %v324_v18 = vld [vmem:[%s724_s18 + $0x228] sm:$0xff]  ;;  %576 = vst [vmem:[%s735_s21 + $0x1f8] sm:$0xff] %v490_v8  ;;  %v493_v20 = vmax.f32 %v407_v9, 0.0  ;;  %v325_v22 = vld [vmem:[%s724_s18 + $0x230] sm:$0xff]  ;;  %v326_v24 = vld [vmem:[%s724_s18 + $0x238] sm:$0xff] }
  0x47   : > { %v410_v21 = vadd.f32 %v324_v18, %v238_v17  ;;  %577 = vst [vmem:[%s735_s21 + $0x200] sm:$0xff] %v491_v13  ;;  %578 = vst [vmem:[%s735_s21 + $0x208] sm:$0xff] %v492_v14  ;;  %v494_v25 = vmax.f32 %v408_v15, 0.0  ;;  %v495_v26 = vmax.f32 %v409_v16, 0.0  ;;  %v411_v27 = vadd.f32 %v325_v22, %v239_v19  ;;  %v241_v29 = vld [vmem:[%s719_s15 + $0x240] sm:$0xff]  ;;  %v242_v31 = vld [vmem:[%s719_s15 + $0x248] sm:$0xff] }
  0x48   : > { %v412_v28 = vadd.f32 %v326_v24, %v240_v23  ;;  %v327_v30 = vld [vmem:[%s724_s18 + $0x240] sm:$0xff]  ;;  %579 = vst [vmem:[%s735_s21 + $0x210] sm:$0xff] %v493_v20  ;;  %v328_v34 = vld [vmem:[%s724_s18 + $0x248] sm:$0xff]  ;;  %v243_v35 = vld [vmem:[%s719_s15 + $0x250] sm:$0xff] }
  0x49   : > { %v496_v32 = vmax.f32 %v410_v21, 0.0  ;;  %v413_v33 = vadd.f32 %v327_v30, %v241_v29  ;;  %v329_v36 = vld [vmem:[%s724_s18 + $0x250] sm:$0xff]  ;;  %580 = vst [vmem:[%s735_s21 + $0x218] sm:$0xff] %v494_v25  ;;  %581 = vst [vmem:[%s735_s21 + $0x220] sm:$0xff] %v495_v26  ;;  %v497_v37 = vmax.f32 %v411_v27, 0.0  ;;  %v414_v39 = vadd.f32 %v328_v34, %v242_v31  ;;  %v244_v41 = vld [vmem:[%s719_s15 + $0x258] sm:$0xff] }
  0x4a   : > { %v498_v38 = vmax.f32 %v412_v28, 0.0  ;;  %v415_v40 = vadd.f32 %v329_v36, %v243_v35  ;;  %v330_v42 = vld [vmem:[%s724_s18 + $0x258] sm:$0xff]  ;;  %v245_v43 = vld [vmem:[%s719_s15 + $0x260] sm:$0xff]  ;;  %v246_v47 = vld [vmem:[%s719_s15 + $0x268] sm:$0xff] }
  0x4b   : > { %582 = vst [vmem:[%s735_s21 + $0x228] sm:$0xff] %v496_v32  ;;  %v499_v44 = vmax.f32 %v413_v33, 0.0  ;;  %v416_v45 = vadd.f32 %v330_v42, %v244_v41  ;;  %v331_v46 = vld [vmem:[%s724_s18 + $0x260] sm:$0xff]  ;;  %v332_v48 = vld [vmem:[%s724_s18 + $0x268] sm:$0xff]  ;;  %583 = vst [vmem:[%s735_s21 + $0x230] sm:$0xff] %v497_v37  ;;  %v500_v49 = vmax.f32 %v414_v39, 0.0 }
  0x4c   : > { %584 = vst [vmem:[%s735_s21 + $0x238] sm:$0xff] %v498_v38  ;;  %v501_v50 = vmax.f32 %v415_v40, 0.0  ;;  %v417_v51 = vadd.f32 %v331_v46, %v245_v43  ;;  %v418_v52 = vadd.f32 %v332_v48, %v246_v47  ;;  %v247_v53 = vld [vmem:[%s719_s15 + $0x270] sm:$0xff]  ;;  %v248_v55 = vld [vmem:[%s719_s15 + $0x278] sm:$0xff]  ;;  %v249_v59 = vld [vmem:[%s719_s15 + $0x280] sm:$0xff] }
  0x4d   : > { %v333_v54 = vld [vmem:[%s724_s18 + $0x270] sm:$0xff]  ;;  %585 = vst [vmem:[%s735_s21 + $0x240] sm:$0xff] %v499_v44  ;;  %v502_v56 = vmax.f32 %v416_v45, 0.0  ;;  %v334_v58 = vld [vmem:[%s724_s18 + $0x278] sm:$0xff]  ;;  %v335_v60 = vld [vmem:[%s724_s18 + $0x280] sm:$0xff] }
  0x4e   : > { %v419_v57 = vadd.f32 %v333_v54, %v247_v53  ;;  %586 = vst [vmem:[%s735_s21 + $0x248] sm:$0xff] %v500_v49  ;;  %587 = vst [vmem:[%s735_s21 + $0x250] sm:$0xff] %v501_v50  ;;  %v503_v61 = vmax.f32 %v417_v51, 0.0  ;;  %v504_v62 = vmax.f32 %v418_v52, 0.0  ;;  %v420_v63 = vadd.f32 %v334_v58, %v248_v55  ;;  %v250_v1 = vld [vmem:[%s719_s15 + $0x288] sm:$0xff]  ;;  %v251_v3 = vld [vmem:[%s719_s15 + $0x290] sm:$0xff] }
  0x4f   : > { %v421_v0 = vadd.f32 %v335_v60, %v249_v59  ;;  %v336_v2 = vld [vmem:[%s724_s18 + $0x288] sm:$0xff]  ;;  %588 = vst [vmem:[%s735_s21 + $0x258] sm:$0xff] %v502_v56  ;;  %v337_v6 = vld [vmem:[%s724_s18 + $0x290] sm:$0xff]  ;;  %v252_v7 = vld [vmem:[%s719_s15 + $0x298] sm:$0xff] }
  0x50   : > { %v505_v4 = vmax.f32 %v419_v57, 0.0  ;;  %v422_v5 = vadd.f32 %v336_v2, %v250_v1  ;;  %v338_v8 = vld [vmem:[%s724_s18 + $0x298] sm:$0xff]  ;;  %589 = vst [vmem:[%s735_s21 + $0x260] sm:$0xff] %v503_v61  ;;  %590 = vst [vmem:[%s735_s21 + $0x268] sm:$0xff] %v504_v62  ;;  %v506_v9 = vmax.f32 %v420_v63, 0.0  ;;  %v423_v11 = vadd.f32 %v337_v6, %v251_v3  ;;  %v253_v13 = vld [vmem:[%s719_s15 + $0x2a0] sm:$0xff] }
  0x51   : > { %v507_v10 = vmax.f32 %v421_v0, 0.0  ;;  %v424_v12 = vadd.f32 %v338_v8, %v252_v7  ;;  %v339_v14 = vld [vmem:[%s724_s18 + $0x2a0] sm:$0xff]  ;;  %v254_v15 = vld [vmem:[%s719_s15 + $0x2a8] sm:$0xff] }
  0x52   : > { %591 = vst [vmem:[%s735_s21 + $0x270] sm:$0xff] %v505_v4  ;;  %v508_v16 = vmax.f32 %v422_v5, 0.0  ;;  %v425_v17 = vadd.f32 %v339_v14, %v253_v13  ;;  %v340_v18 = vld [vmem:[%s724_s18 + $0x2a8] sm:$0xff]  ;;  %592 = vst [vmem:[%s735_s21 + $0x278] sm:$0xff] %v506_v9  ;;  %v509_v19 = vmax.f32 %v423_v11, 0.0 }
  0x53   : > { %593 = vst [vmem:[%s735_s21 + $0x280] sm:$0xff] %v507_v10  ;;  %v510_v20 = vmax.f32 %v424_v12, 0.0  ;;  %v426_v21 = vadd.f32 %v340_v18, %v254_v15 }
  0x54   : > { %594 = vst [vmem:[%s735_s21 + $0x288] sm:$0xff] %v508_v16  ;;  %v511_v22 = vmax.f32 %v425_v17, 0.0  ;;  %595 = vst [vmem:[%s735_s21 + $0x290] sm:$0xff] %v509_v19 }
  0x55   : > { %596 = vst [vmem:[%s735_s21 + $0x298] sm:$0xff] %v510_v20  ;;  %v512_v23 = vmax.f32 %v426_v21, 0.0 }
  0x56   : > { %597 = vst [vmem:[%s735_s21 + $0x2a0] sm:$0xff] %v511_v22 }
  0x57   : > { %598 = vst [vmem:[%s735_s21 + $0x2a8] sm:$0xff] %v512_v23 }
  0x58 PF: > { %s12_s9 = sadd.s32 1, %s691_s9  }
  0x59   : > { %p9_p4 = scmp.ge.s32.totalorder %s12_s9, 4  }
  0x5b   :  { %11 = sbr.rel (!%p9_p4) target bundleno = 1 (0x1), region = 61 }

</bundles_post_ra>
